<compile_context>
chip_gen: v7x
topology: tpu7x:2x2x1
jax: 0.10.0
libtpu: 0.0.40
codegen_flags: <defaults>
</compile_context>

<pallas_src>
import math
import functools

import jax
import jax.numpy as jnp
from jax.experimental import pallas as pl
from jax.experimental.pallas import tpu as pltpu


# ---------------------------------------------------------------------------
# Pallas kernel: tiled  y = x @ W^T + bias
#   bf16 matmul inputs (MXU-native), f32 accumulation directly in the
#   resident output block (index map ignores kk -> acts as the accumulator).
# ---------------------------------------------------------------------------
def phm_matmul_kernel(x_ref, wt_ref, b_ref, o_ref):
    # x_ref : (tm, tk) bf16   wt_ref : (tk, tn) bf16
    # b_ref : (1,  tn) f32    o_ref  : (tm, tn) f32  (resident across K)
    k = pl.program_id(2)

    @pl.when(k == 0)
    def _():
        o_ref[...] = jnp.broadcast_to(b_ref[...], o_ref.shape)

    o_ref[...] += jnp.dot(x_ref[...], wt_ref[...],
                          preferred_element_type=jnp.float32)


# ---------------------------------------------------------------------------
# Helpers
# ---------------------------------------------------------------------------
def _round_up(x, m):
    return ((x + m - 1) // m) * m


def _pad2d(arr, rows, cols):
    """Pad only the ragged edge; no-op (no HBM pass) when already aligned."""
    r, c = arr.shape
    if r == rows and c == cols:
        return arr
    return jnp.pad(arr, ((0, rows - r), (0, cols - c)))


def _device_tile_caps():
    """Per-generation (tm, tn, tk, vmem_budget_bytes) caps."""
    try:
        kind = jax.devices()[0].device_kind.lower()
    except Exception:  # pragma: no cover - defensive, e.g. odd backends
        kind = ""
    if "v7" in kind:
        # 64 MiB VMEM / TC -> conservative budget; 2 TCs share the grid via
        # the ("parallel","parallel",...) semantics.
        return 512, 512, 512, 48 * 1024 * 1024
    if "v6" in kind:
        # 128 MiB VMEM, 918 TF/s MXU -> maximize reuse per HBM byte.
        return 512, 512, 1024, 96 * 1024 * 1024
    if "v5" in kind:
        # v5e: low HBM BW + single vst slot -> big tk amortizes the per-step
        # accumulator RMW.
        return 512, 512, 1024, 96 * 1024 * 1024
    # Unknown chip: v7x-safe defaults.
    return 512, 512, 512, 48 * 1024 * 1024


# ---------------------------------------------------------------------------
# Wrapper: (ragged-edge) pad to MXU/lane friendly shapes, launch tiled kernel
# ---------------------------------------------------------------------------
def phm_linear_pallas(x2, wt, bias):
    """y = x2 @ wt + bias, with x2:(M,K), wt:(K,N), bias:(N,)."""
    m, k = x2.shape
    k2, n = wt.shape
    assert k == k2

    cap_tm, cap_tn, cap_tk, vmem_cap = _device_tile_caps()

    # Shrink tiles toward the (aligned) problem size so small dims don't
    # over-pad. tm aligned to 16 (bf16 sublane packing), K/N tiles to 128.
    tm = min(cap_tm, _round_up(m, 16))
    tk = min(cap_tk, _round_up(k, 128))
    tn = min(cap_tn, _round_up(n, 128))

    mp = _round_up(m, tm)
    kp = _round_up(k, tk)
    np_ = _round_up(n, tn)

    # Zero-pad only where needed. Padded K columns contribute 0 to the
    # accumulator; padded M rows / N columns are sliced off below.
    xp = _pad2d(x2.astype(jnp.bfloat16), mp, kp)
    wtp = _pad2d(wt.astype(jnp.bfloat16), kp, np_)
    bp = _pad2d(bias.astype(jnp.float32).reshape(1, n), 1, np_)

    grid = (mp // tm, np_ // tn, kp // tk)  # reduction (K) axis last

    # Double-buffered bf16 input tiles + f32 output tiles + bias, with slack,
    # clamped to the per-generation physical budget.
    vmem_need = 2 * (tm * tk + tk * tn) * 2 + 2 * tm * tn * 4 + 2 * tn * 4
    vmem_limit = min(max(2 * vmem_need, 16 * 1024 * 1024), vmem_cap)

    y = pl.pallas_call(
        phm_matmul_kernel,
        out_shape=jax.ShapeDtypeStruct((mp, np_), jnp.float32),
        grid_spec=pltpu.PrefetchScalarGridSpec(
            num_scalar_prefetch=0,
            grid=grid,
            in_specs=[
                pl.BlockSpec((tm, tk), lambda i, j, kk: (i, kk)),   # x tile
                pl.BlockSpec((tk, tn), lambda i, j, kk: (kk, j)),   # W^T tile
                pl.BlockSpec((1, tn), lambda i, j, kk: (0, j)),     # bias
            ],
            out_specs=pl.BlockSpec((tm, tn), lambda i, j, kk: (i, j)),
        ),
        compiler_params=pltpu.CompilerParams(
            dimension_semantics=("parallel", "parallel", "arbitrary"),
            vmem_limit_bytes=vmem_limit,
        ),
    )(xp, wtp, bp)

    if mp == m and np_ == n:
        return y
    return y[:m, :n]


# ---------------------------------------------------------------------------
# PHM forward: fused weight composition + linear
# ---------------------------------------------------------------------------
def phm_forward(x, a, s, bias, use_pallas=None):
    # a: (n, n, n), s: (n, out//n, in//n)
    n, o0, i0 = s.shape
    out_features = n * o0
    in_features = n * i0

    lead = x.shape[:-1]
    x2 = x.reshape(-1, in_features)
    m = x2.shape[0]

    if use_pallas is None:
        # For tiny problems the pad copies + fixed pallas_call overhead
        # dominate; fall back to a plain XLA dot.
        use_pallas = (m * in_features * out_features) >= (1 << 20)

    if use_pallas:
        # W^T[q*i0 + t, p*o0 + r] = sum_k a[k,p,q] * s[k,r,t]
        # Built directly (no W-then-transpose) and cast to bf16 at the source.
        # TODO(synk): for small-M (decode) regimes, compose the (tk, tn) W^T
        # tile on the fly from a/s inside the kernel instead of materializing
        # the full (in x out) weight in HBM.
        wt = (jnp.einsum('kpq,krt->qtpr', a, s)
              .astype(jnp.bfloat16)
              .reshape(in_features, out_features))
        y = phm_linear_pallas(x2, wt, bias)
    else:
        wt = jnp.einsum('kpq,krt->qtpr', a, s).reshape(in_features,
                                                       out_features)
        y = x2 @ wt + bias

    return y.reshape(lead + (out_features,))


# ---------------------------------------------------------------------------
# Reference kron (mirrors the torch code) — used only for the check
# ---------------------------------------------------------------------------
def kronecker_product1(a, b):
    res = a[..., :, None, :, None] * b[..., None, :, None, :]
    return res.reshape(a.shape[0],
                       a.shape[-2] * b.shape[-2],
                       a.shape[-1] * b.shape[-1])


# ---------------------------------------------------------------------------
# Deterministic parameter init (mirrors PHMLayer.__init__ shapes / init rules)
# ---------------------------------------------------------------------------
def init_phm_params(key, n, in_features, out_features):
    ka, ks, kb = jax.random.split(key, 3)

    fan_in_a, fan_out_a = n * n, n * n
    bound_a = math.sqrt(6.0 / (fan_in_a + fan_out_a))
    a = jax.random.uniform(ka, (n, n, n), jnp.float32, -bound_a, bound_a)

    o0, i0 = out_features // n, in_features // n
    fan_in_s, fan_out_s = o0 * i0, n * i0
    bound_s = math.sqrt(6.0 / (fan_in_s + fan_out_s))
    s = jax.random.uniform(ks, (n, o0, i0), jnp.float32, -bound_s, bound_s)

    bound_b = 1.0 / math.sqrt(in_features)
    bias = jax.random.uniform(kb, (out_features,), jnp.float32,
                              -bound_b, bound_b)
    return a, s, bias


if __name__ == "__main__":
    n = 4
    in_features = 32
    out_features = 16
    batch, seq = 2, 8

    key = jax.random.PRNGKey(0)
    kx, kp = jax.random.split(key)
    x = jax.random.normal(kx, (batch, seq, in_features), jnp.float32)
    a, s, bias = init_phm_params(kp, n, in_features, out_features)

    # Force the Pallas path so the kernel is exercised at demo scale (the
    # auto-dispatch would hand this tiny shape to XLA's dot).
    fwd = jax.jit(functools.partial(phm_forward, use_pallas=True))
    y = jax.block_until_ready(fwd(x, a, s, bias))

    # pure-JAX f32 reference of the full forward (kernel uses bf16 matmul
    # inputs with f32 accumulation -> loosened tolerance).
    w_ref = jnp.sum(kronecker_product1(a, s), axis=0)
    y_ref = (x.reshape(-1, in_features) @ w_ref.T + bias).reshape(
        batch, seq, out_features)

    assert y.shape == (batch, seq, out_features)
    err = float(jnp.max(jnp.abs(y - y_ref)))
    assert jnp.allclose(y, y_ref, atol=5e-2, rtol=5e-2), err

    print("KERNEL_OK")
</pallas_src>

<mosaic_0001>
module attributes {stable_mosaic.version = 11 : i64} {
  func.func @phm_matmul_kernel(%arg0: i32, %arg1: i32, %arg2: i32, %arg3: memref<16x128xbf16, #tpu.memory_space<vmem>>, %arg4: memref<128x128xbf16, #tpu.memory_space<vmem>>, %arg5: memref<1x128xf32, #tpu.memory_space<vmem>>, %arg6: memref<16x128xf32, #tpu.memory_space<vmem>>) attributes {dimension_semantics = [#tpu.dimension_semantics<parallel>, #tpu.dimension_semantics<parallel>, #tpu.dimension_semantics<arbitrary>], iteration_bounds = array<i64: 1, 1, 1>, scalar_prefetch = 0 : i64, scratch_operands = 0 : i64, tpu.core_type = #tpu.core_type<tc>, window_params = [{transform_indices = @transform_0, window_bounds = array<i64: 16, 128>}, {transform_indices = @transform_1, window_bounds = array<i64: 128, 128>}, {transform_indices = @transform_2, window_bounds = array<i64: 1, 128>}, {transform_indices = @transform_3, window_bounds = array<i64: 16, 128>}]} {
    %c0_i32 = arith.constant 0 : i32
    %0 = arith.cmpi eq, %arg2, %c0_i32 : i32
    %1 = arith.extui %0 : i1 to i32
    %c0_i32_0 = arith.constant 0 : i32
    %2 = arith.cmpi ne, %1, %c0_i32_0 : i32
    scf.if %2 {
      %c0_8 = arith.constant 0 : index
      %c0_9 = arith.constant 0 : index
      %9 = vector.load %arg5[%c0_8, %c0_9] : memref<1x128xf32, #tpu.memory_space<vmem>>, vector<1x128xf32>
      %10 = vector.shape_cast %9 : vector<1x128xf32> to vector<1x128xf32>
      %11 = vector.broadcast %10 : vector<1x128xf32> to vector<16x128xf32>
      %c0_10 = arith.constant 0 : index
      %c0_11 = arith.constant 0 : index
      %12 = vector.load %arg6[%c0_10, %c0_11] : memref<16x128xf32, #tpu.memory_space<vmem>>, vector<16x128xf32>
      tpu.vector_store %arg6[%c0_10, %c0_11], %11 {strides = array<i32>} : memref<16x128xf32, #tpu.memory_space<vmem>>, vector<16x128xf32>,
    } else {
    }
    %c0 = arith.constant 0 : index
    %c0_1 = arith.constant 0 : index
    %3 = vector.load %arg6[%c0, %c0_1] : memref<16x128xf32, #tpu.memory_space<vmem>>, vector<16x128xf32>
    %c0_2 = arith.constant 0 : index
    %c0_3 = arith.constant 0 : index
    %4 = vector.load %arg3[%c0_2, %c0_3] : memref<16x128xbf16, #tpu.memory_space<vmem>>, vector<16x128xbf16>
    %c0_4 = arith.constant 0 : index
    %c0_5 = arith.constant 0 : index
    %5 = vector.load %arg4[%c0_4, %c0_5] : memref<128x128xbf16, #tpu.memory_space<vmem>>, vector<128x128xbf16>
    %cst = arith.constant dense<0.000000e+00> : vector<16x128xf32>
    %6 = tpu.matmul %4, %5, %cst {dimension_numbers = #tpu.dot_dimension_numbers<[1], [0], [0], [1], [0, 0, 1, 1], [], []>} : vector<16x128xbf16>, vector<128x128xbf16>, vector<16x128xf32> -> vector<16x128xf32>
    %7 = arith.addf %3, %6 : vector<16x128xf32>
    %c0_6 = arith.constant 0 : index
    %c0_7 = arith.constant 0 : index
    %8 = vector.load %arg6[%c0_6, %c0_7] : memref<16x128xf32, #tpu.memory_space<vmem>>, vector<16x128xf32>
    tpu.vector_store %arg6[%c0_6, %c0_7], %7 {strides = array<i32>} : memref<16x128xf32, #tpu.memory_space<vmem>>, vector<16x128xf32>,
    return
  }
  func.func @transform_0(%arg0: i32, %arg1: i32, %arg2: i32) -> (i32, i32) {
    %c0_i32 = arith.constant 0 : i32
    return %arg0, %arg2 : i32, i32
  }
  func.func @transform_1(%arg0: i32, %arg1: i32, %arg2: i32) -> (i32, i32) {
    %c0_i32 = arith.constant 0 : i32
    return %arg2, %arg1 : i32, i32
  }
  func.func @transform_2(%arg0: i32, %arg1: i32, %arg2: i32) -> (i32, i32) {
    %c0_i32 = arith.constant 0 : i32
    %c0_i32_0 = arith.constant 0 : i32
    return %c0_i32, %arg1 : i32, i32
  }
  func.func @transform_3(%arg0: i32, %arg1: i32, %arg2: i32) -> (i32, i32) {
    %c0_i32 = arith.constant 0 : i32
    return %arg0, %arg1 : i32, i32
  }
}

</mosaic_0001>

<bundles_post_ra>
// kernel: phm_forward.1
= control target key start
LH: loop header
LB: loop body
LE: loop exit
PB: predicated region body
PF: predicated region fallthrough
CT: control target
= control target key end

     0   :  { %v201_v0 = vmov 0.0   ;;  %vm202_vm0 = vmmov 0   ;;  %s259_s1 = inlined_call_operand.vmem [shape: bf16[128,128], index: 1, kind: input, shape index: {}]   ;;  %s260_s0 = inlined_call_operand.vmem [shape: bf16[16,128], index: 0, kind: input, shape index: {}]   ;;  %s261_s2 = inlined_call_operand.vmem [shape: f32[1,128], index: 2, kind: input, shape index: {}]   ;;  %s262_s3 = inlined_call_operand.vmem [shape: f32[16,128], index: 3, kind: output, shape index: {}]  }
   0x1   :  { %170 = vmatprep.subr.bf16.mxu0 %v201_v0  ;;  %v192_v1 = vld [vmem:[%s259_s1] sm:$0xff]   ;;  %186 = vmatprep.mubr.msk.bf16.mxu0 %vm202_vm0, %v201_v0  ;;  %v193_v2 = vld [vmem:[%s259_s1 + $0x8] sm:$0xff]   ;;  %v194_v3 = vld [vmem:[%s259_s1 + $0x10] sm:$0xff]  }
   0x2   :  { %171 = vmatpush3.bf16.msra.mxu0 %v192_v1  ;;  %v195_v4 = vld [vmem:[%s259_s1 + $0x18] sm:$0xff]   ;;  %v196_v5 = vld [vmem:[%s259_s1 + $0x20] sm:$0xff]   ;;  %v197_v6 = vld [vmem:[%s259_s1 + $0x28] sm:$0xff]  }
   0x3   :  { %172 = vmatprep.subr.bf16.mxu0 %v201_v0  ;;  %v198_v7 = vld [vmem:[%s259_s1 + $0x30] sm:$0xff]   ;;  %v199_v8 = vld [vmem:[%s259_s1 + $0x38] sm:$0xff]   ;;  %v200_v9 = vld [vmem:[%s260_s0] sm:$0xff]  }
   0x4   :  { %v151_v10 = vld [vmem:[%s261_s2] ss:$0 sm:$0xff] }
   0x6   :  { %173 = vmatpush3.bf16.msra.mxu0 %v193_v2 }
   0x7   :  { %174 = vmatprep.subr.bf16.mxu0 %v201_v0 }
   0xa   :  { %175 = vmatpush3.bf16.msra.mxu0 %v194_v3 }
   0xb   :  { %176 = vmatprep.subr.bf16.mxu0 %v201_v0 }
   0xe   :  { %177 = vmatpush3.bf16.msra.mxu0 %v195_v4 }
   0xf   :  { %178 = vmatprep.subr.bf16.mxu0 %v201_v0 }
  0x12   :  { %179 = vmatpush3.bf16.msra.mxu0 %v196_v5 }
  0x13   :  { %180 = vmatprep.subr.bf16.mxu0 %v201_v0 }
  0x16   :  { %181 = vmatpush3.bf16.msra.mxu0 %v197_v6 }
  0x17   :  { %182 = vmatprep.subr.bf16.mxu0 %v201_v0 }
  0x1a   :  { %183 = vmatpush3.bf16.msra.mxu0 %v198_v7 }
  0x1b   :  { %184 = vmatprep.subr.bf16.mxu0 %v201_v0 }
  0x1e   :  { %185 = vmatpush3.bf16.msra.mxu0 %v199_v8 }
  0x21   :  { %187 = vmatmul.mubr.bf16.vlgmr.msra.gmra.mrb[0].mxu0 %v200_v9 }
  0xf4   :  { %v136_v11 = vpop.f32.mrb[0].mxu0 }
  0xf5   :  { %v143_v12 = vadd.f32 %v151_v10, %v136_v11  ;;  %v188_v13 = vpop.f32.mrb[1].mxu0 }
  0xf6   :  { %v139_v14 = vpop.f32.mrb[2].mxu0 }
  0xf7   :  { %145 = vst [vmem:[%s262_s3] sm:$0xff] %v143_v12  ;;  %v144_v15 = vadd.f32 %v151_v10, %v139_v14  ;;  %v189_v16 = vpop.f32.mrb[3].mxu0 }
  0xf9   :  { %146 = vst [vmem:[%s262_s3 + $0x8] sm:$0xff] %v144_v15 }

</bundles_post_ra>
